<compile_context>
chip_gen: v5e
topology: v5e:2x2
jax: 0.10.0
libtpu: 0.0.40
codegen_flags: <defaults>
</compile_context>

<pallas_src>
import functools

import jax
import jax.numpy as jnp
from jax.experimental import pallas as pl
from jax.experimental.pallas import tpu as pltpu

A_PAD = 128     # lane-dense padded logits width used only inside the kernel
NEG_BIG = -1e30  # bias value for padded lanes (finite, exp() underflows to 0)


def _round_up(n, m):
    return ((n + m - 1) // m) * m


def _policy_kernel(x_ref, w1_ref, b1_ref, w2_ref, b2_ref, o_ref, *, n_actions):
    # fc1: x @ W1 + b1, ReLU.  K=4/H=16 is tiny; the kernel is HBM / grid-step
    # bound, so plain jnp.dot is fine.
    x = x_ref[...]
    h = jnp.dot(x, w1_ref[...], preferred_element_type=jnp.float32) + b1_ref[...]
    h = jnp.maximum(h, 0.0)

    # fc2 into a lane-dense (tm, 128) logits block.  Padded lanes carry
    # logits == -1e30 (0 * h + NEG_BIG via the padded bias), so no in-kernel
    # mask is needed and they vanish in the softmax.
    logits = jnp.dot(h, w2_ref[...], preferred_element_type=jnp.float32) + b2_ref[...]

    # Numerically stable softmax with exact normalization.
    m = jnp.max(logits, axis=-1, keepdims=True)
    e = jnp.exp(logits - m)
    denom = jnp.sum(e, axis=-1, keepdims=True)
    probs = e / denom

    # Store only the real A-wide result (no padded HBM writeback).
    o_ref[...] = probs[:, :n_actions].astype(o_ref.dtype)


def _choose_tile(batch, block_rows):
    rows = _round_up(max(batch, 1), 8)          # sublane-aligned tile size
    tm = min(block_rows, rows)
    # Keep >= 2 grid steps for larger batches so v7x's two TensorCores both get
    # work under dimension_semantics=("parallel",); harmless on v5e/v6e.
    if rows >= 1024:
        tm = min(tm, _round_up(pl.cdiv(rows, 2), 8))
    return tm


def policy_network_forward(x, w1, b1, w2, b2, *, block_rows=2048):
    """Forward pass of PolicyNetwork as a batch-tiled Pallas kernel.

    x:  (B, state_size)     float32
    w1: (state_size, H)     float32
    b1: (1, H)              float32
    w2: (H, action_size)    float32
    b2: (1, action_size)    float32
    returns (B, action_size) float32 probabilities (rows sum to 1)
    """
    B, S = x.shape
    H = w1.shape[1]
    A = w2.shape[1]
    assert A <= A_PAD, "action_size must fit in one 128-lane vreg width"

    tm = _choose_tile(B, block_rows)
    grid = (pl.cdiv(B, tm),)                     # partial last block is fine:
                                                 # rows are independent, OOB
                                                 # writes are dropped.

    # Pad fc2 weights/bias to the lane-dense kernel width.  Padded weight
    # columns are exactly 0 and padded bias lanes are -1e30, so padded logits
    # are exactly -1e30 (the softmax mask is baked into resident data).
    pad_w = A_PAD - A
    w2_p = jnp.pad(w2, ((0, 0), (0, pad_w)))
    b2_p = jnp.pad(b2, ((0, 0), (0, pad_w)), constant_values=NEG_BIG)

    flops = 2 * B * (S * H + H * A_PAD) + 6 * B * A_PAD
    bytes_accessed = 4 * (B * S + B * A + S * H + H + H * A_PAD + A_PAD)
    transcendentals = B * A_PAD  # exp

    out = pl.pallas_call(
        functools.partial(_policy_kernel, n_actions=A),
        out_shape=jax.ShapeDtypeStruct((B, A), jnp.float32),
        grid=grid,
        in_specs=[
            pl.BlockSpec((tm, S), lambda i: (i, 0)),        # batch-tiled input
            pl.BlockSpec((S, H), lambda i: (0, 0)),         # weights / biases
            pl.BlockSpec((1, H), lambda i: (0, 0)),         # stay VMEM-resident
            pl.BlockSpec((H, A_PAD), lambda i: (0, 0)),     # across batch tiles
            pl.BlockSpec((1, A_PAD), lambda i: (0, 0)),
        ],
        out_specs=pl.BlockSpec((tm, A), lambda i: (i, 0)),  # true A-wide store
        compiler_params=pltpu.CompilerParams(
            dimension_semantics=("parallel",)),             # megacore on v7x
        cost_estimate=pl.CostEstimate(
            flops=flops,
            transcendentals=transcendentals,
            bytes_accessed=bytes_accessed),
    )(x, w1, b1, w2_p, b2_p)

    return out


def init_params(key, state_size, action_size, fc1_units=16):
    """Deterministic init matching PyTorch nn.Linear default: U(-1/sqrt(fan_in), +)."""
    k1, k2, k3, k4 = jax.random.split(key, 4)
    bound1 = 1.0 / jnp.sqrt(jnp.float32(state_size))
    bound2 = 1.0 / jnp.sqrt(jnp.float32(fc1_units))
    w1 = jax.random.uniform(k1, (state_size, fc1_units), jnp.float32, -bound1, bound1)
    b1 = jax.random.uniform(k2, (1, fc1_units), jnp.float32, -bound1, bound1)
    w2 = jax.random.uniform(k3, (fc1_units, action_size), jnp.float32, -bound2, bound2)
    b2 = jax.random.uniform(k4, (1, action_size), jnp.float32, -bound2, bound2)
    return w1, b1, w2, b2


def _reference(x, w1, b1, w2, b2):
    h = jnp.maximum(x @ w1 + b1, 0.0)
    return jax.nn.softmax(h @ w2 + b2, axis=-1)


if __name__ == "__main__":
    # CartPole-like sizes: state_size=4, action_size=2, fc1_units=16, batch=8
    state_size, action_size, fc1_units, batch = 4, 2, 16, 8

    key = jax.random.PRNGKey(0)
    kx, kp, kx2 = jax.random.split(key, 3)
    x = jax.random.normal(kx, (batch, state_size), jnp.float32)
    w1, b1, w2, b2 = init_params(kp, state_size, action_size, fc1_units)

    out = policy_network_forward(x, w1, b1, w2, b2)
    out = jax.block_until_ready(out)

    # sanity check against plain-JAX reference (exact divide -> tight tolerance)
    ref = _reference(x, w1, b1, w2, b2)
    assert out.shape == (batch, action_size)
    assert jnp.allclose(out, ref, atol=1e-5, rtol=1e-5), "mismatch vs reference"
    assert jnp.allclose(jnp.sum(out, axis=-1), 1.0, atol=1e-5)

    # exercise the multi-tile / partial-last-block path (ragged batch, grid > 1)
    big_b = 1500
    xb = jax.random.normal(kx2, (big_b, state_size), jnp.float32)
    out_b = jax.block_until_ready(policy_network_forward(xb, w1, b1, w2, b2))
    ref_b = _reference(xb, w1, b1, w2, b2)
    assert out_b.shape == (big_b, action_size)
    assert jnp.allclose(out_b, ref_b, atol=1e-5, rtol=1e-5), "mismatch vs reference (tiled)"
    assert jnp.allclose(jnp.sum(out_b, axis=-1), 1.0, atol=1e-5)

    print("KERNEL_OK")
</pallas_src>

<mosaic_0001>
module attributes {stable_mosaic.version = 11 : i64} {
  func.func @_policy_kernel(%arg0: i32, %arg1: memref<8x4xf32, #tpu.memory_space<vmem>>, %arg2: memref<4x16xf32, #tpu.memory_space<vmem>>, %arg3: memref<1x16xf32, #tpu.memory_space<vmem>>, %arg4: memref<16x128xf32, #tpu.memory_space<vmem>>, %arg5: memref<1x128xf32, #tpu.memory_space<vmem>>, %arg6: memref<8x2xf32, #tpu.memory_space<vmem>>) attributes {dimension_semantics = [#tpu.dimension_semantics<parallel>], iteration_bounds = array<i64: 1>, scalar_prefetch = 0 : i64, scratch_operands = 0 : i64, tpu.core_type = #tpu.core_type<tc>, window_params = [{transform_indices = @transform_0, window_bounds = array<i64: 8, 4>}, {pipeline_mode = #tpu.pipeline_mode<synchronous>, transform_indices = @transform_1, window_bounds = array<i64: 4, 16>}, {pipeline_mode = #tpu.pipeline_mode<synchronous>, transform_indices = @transform_2, window_bounds = array<i64: 1, 16>}, {pipeline_mode = #tpu.pipeline_mode<synchronous>, transform_indices = @transform_3, window_bounds = array<i64: 16, 128>}, {pipeline_mode = #tpu.pipeline_mode<synchronous>, transform_indices = @transform_4, window_bounds = array<i64: 1, 128>}, {transform_indices = @transform_5, window_bounds = array<i64: 8, 2>}]} {
    %c0 = arith.constant 0 : index
    %c0_0 = arith.constant 0 : index
    %0 = vector.load %arg1[%c0, %c0_0] : memref<8x4xf32, #tpu.memory_space<vmem>>, vector<8x4xf32>
    %c0_1 = arith.constant 0 : index
    %c0_2 = arith.constant 0 : index
    %1 = vector.load %arg2[%c0_1, %c0_2] : memref<4x16xf32, #tpu.memory_space<vmem>>, vector<4x16xf32>
    %cst = arith.constant dense<0.000000e+00> : vector<8x16xf32>
    %2 = tpu.matmul %0, %1, %cst {dimension_numbers = #tpu.dot_dimension_numbers<[1], [0], [0], [1], [0, 0, 1, 1], [], []>} : vector<8x4xf32>, vector<4x16xf32>, vector<8x16xf32> -> vector<8x16xf32>
    %c0_3 = arith.constant 0 : index
    %c0_4 = arith.constant 0 : index
    %3 = vector.load %arg3[%c0_3, %c0_4] : memref<1x16xf32, #tpu.memory_space<vmem>>, vector<1x16xf32>
    %4 = vector.broadcast %3 : vector<1x16xf32> to vector<8x16xf32>
    %5 = arith.addf %2, %4 : vector<8x16xf32>
    %cst_5 = arith.constant 0.000000e+00 : f32
    %6 = vector.broadcast %cst_5 : f32 to vector<8x16xf32>
    %7 = arith.maximumf %5, %6 : vector<8x16xf32>
    %c0_6 = arith.constant 0 : index
    %c0_7 = arith.constant 0 : index
    %8 = vector.load %arg4[%c0_6, %c0_7] : memref<16x128xf32, #tpu.memory_space<vmem>>, vector<16x128xf32>
    %cst_8 = arith.constant dense<0.000000e+00> : vector<8x128xf32>
    %9 = tpu.matmul %7, %8, %cst_8 {dimension_numbers = #tpu.dot_dimension_numbers<[1], [0], [0], [1], [0, 0, 1, 1], [], []>} : vector<8x16xf32>, vector<16x128xf32>, vector<8x128xf32> -> vector<8x128xf32>
    %c0_9 = arith.constant 0 : index
    %c0_10 = arith.constant 0 : index
    %10 = vector.load %arg5[%c0_9, %c0_10] : memref<1x128xf32, #tpu.memory_space<vmem>>, vector<1x128xf32>
    %11 = vector.broadcast %10 : vector<1x128xf32> to vector<8x128xf32>
    %12 = arith.addf %9, %11 : vector<8x128xf32>
    %cst_11 = arith.constant dense<0xFF800000> : vector<8xf32>
    %13 = vector.multi_reduction <maximumf>, %12, %cst_11 [1] : vector<8x128xf32> to vector<8xf32>
    %14 = vector.shape_cast %13 : vector<8xf32> to vector<8x1xf32>
    %15 = vector.broadcast %14 : vector<8x1xf32> to vector<8x128xf32>
    %16 = arith.subf %12, %15 : vector<8x128xf32>
    %17 = math.exp %16 : vector<8x128xf32>
    %cst_12 = arith.constant dense<0.000000e+00> : vector<8xf32>
    %18 = vector.multi_reduction <add>, %17, %cst_12 [1] : vector<8x128xf32> to vector<8xf32>
    %19 = vector.shape_cast %18 : vector<8xf32> to vector<8x1xf32>
    %20 = vector.broadcast %19 : vector<8x1xf32> to vector<8x128xf32>
    %21 = arith.divf %17, %20 : vector<8x128xf32>
    %22 = vector.extract_strided_slice %21 {offsets = [0, 0], sizes = [8, 2], strides = [1, 1]} : vector<8x128xf32> to vector<8x2xf32>
    %c0_13 = arith.constant 0 : index
    %c0_14 = arith.constant 0 : index
    %23 = vector.load %arg6[%c0_13, %c0_14] : memref<8x2xf32, #tpu.memory_space<vmem>>, vector<8x2xf32>
    tpu.vector_store %arg6[%c0_13, %c0_14], %22 {strides = array<i32>} : memref<8x2xf32, #tpu.memory_space<vmem>>, vector<8x2xf32>,
    return
  }
  func.func @transform_0(%arg0: i32) -> (i32, i32) {
    %c0_i32 = arith.constant 0 : i32
    %c0_i32_0 = arith.constant 0 : i32
    return %arg0, %c0_i32 : i32, i32
  }
  func.func @transform_1(%arg0: i32) -> (i32, i32) {
    %c0_i32 = arith.constant 0 : i32
    %c0_i32_0 = arith.constant 0 : i32
    %c0_i32_1 = arith.constant 0 : i32
    return %c0_i32, %c0_i32_0 : i32, i32
  }
  func.func @transform_2(%arg0: i32) -> (i32, i32) {
    %c0_i32 = arith.constant 0 : i32
    %c0_i32_0 = arith.constant 0 : i32
    %c0_i32_1 = arith.constant 0 : i32
    return %c0_i32, %c0_i32_0 : i32, i32
  }
  func.func @transform_3(%arg0: i32) -> (i32, i32) {
    %c0_i32 = arith.constant 0 : i32
    %c0_i32_0 = arith.constant 0 : i32
    %c0_i32_1 = arith.constant 0 : i32
    return %c0_i32, %c0_i32_0 : i32, i32
  }
  func.func @transform_4(%arg0: i32) -> (i32, i32) {
    %c0_i32 = arith.constant 0 : i32
    %c0_i32_0 = arith.constant 0 : i32
    %c0_i32_1 = arith.constant 0 : i32
    return %c0_i32, %c0_i32_0 : i32, i32
  }
  func.func @transform_5(%arg0: i32) -> (i32, i32) {
    %c0_i32 = arith.constant 0 : i32
    %c0_i32_0 = arith.constant 0 : i32
    return %arg0, %c0_i32 : i32, i32
  }
}

</mosaic_0001>

<bundles_post_ra>
// kernel: tpu_custom_call.1
= control target key start
LH: loop header
LB: loop body
LE: loop exit
PB: predicated region body
PF: predicated region fallthrough
CT: control target
= control target key end

     0   :  { %10 = vsyncpa [#allocation3], 0  ;;  %s168_s21 = smov [#allocation2]   ;;  %s169_s23 = smov 128   ;;  %s219_s0 = inlined_call_operand.vmem [shape: f32[8,4], index: 0, kind: input, shape index: {}]   ;;  %s220_s1 = inlined_call_operand.vmem [shape: f32[4,16], index: 1, kind: input, shape index: {}]   ;;  %s221_s2 = inlined_call_operand.vmem [shape: f32[1,16], index: 2, kind: input, shape index: {}]   ;;  %s222_s3 = inlined_call_operand.hbm [shape: f32[16,128], index: 3, kind: input, shape index: {}]   ;;  %s223_s4 = inlined_call_operand.vmem [shape: f32[1,128], index: 4, kind: input, shape index: {}]   ;;  %s224_s5 = inlined_call_operand.vmem [shape: f32[8,2], index: 5, kind: output, shape index: {}]  }
   0x1   :  { %s21_s20 = sshll.u32 %s222_s3, 4  ;;  %s23_s22 = sshll.u32 %s168_s21, 4  ;;  %s22_s20 = int_to_ptr.hbm [resolvable:$true] %s21_s20  ;;  %s24_s22 = int_to_ptr.vmem [resolvable:$true] %s23_s22 }
   0x2   :  { %s170_s24 = smov 8  }
   0x3   :  { %29 = dma.hbm_to_vmem [thread:$0]  %s22_s20, 256, %s24_s22, [#allocation3], %s169_s23, %s169_s23, %s170_s24  }
   0x4   :  { %166 = dma.done.wait [#allocation3], 256  }
   0x5   :  { %167 = vsyncadd [#allocation3], 4294967040  ;;  %vm46_vm0 = vcmask 1043456   ;;  %vm42_vm1 = vcmask 31744   ;;  %v37_v0 = vld [vmem:[%s220_s1] sm:$0xf] }
   0x6   :  { %v36_v1 = vld [vmem:[%s219_s0] sm:$0xff]  ;;  %130 = vmatpush.msk.msra.mxu0 %vm46_vm0, %v37_v0  ;;  %v72_v2 = vld [vmem:[#allocation2 + $0x8] sm:$0xff]  ;;  %vm77_vm2 = vcmask 130048   ;;  %vm123_vm7 = vcmask 15360  }
   0x7   :  { %131 = vmatmul.msk.f32.vlgmr.msra.gmra.mxu0 %vm42_vm1, %v36_v1  ;;  %95 = vmatpush.msra.mxu1 %v72_v2  ;;  %v71_v3 = vld [vmem:[#allocation2] sm:$0xff] }
   0x8   :  { %v136_v4 = vld [vmem:[%s221_s2] ss:$0 sm:$0xff] }
   0x9   :  { %96 = vmatpush.msra.mxu1 %v71_v3  ;;  %v137_v8 = vld [vmem:[%s223_s4] ss:$0 sm:$0xff] }
  0x84   :  { %v67_v5 = vpop.f32.mrf.mxu0 }
  0x85   :  { %v68_v6 = vadd.f32 %v136_v4, %v67_v5 }
  0x87   :  { %v70_v7 = vmax.f32 %v68_v6, 0.0 }
  0x89   :  { %132 = vmatmul.msk.f32.vlgmr.msra.gmra.mxu1 %vm77_vm2, %v70_v7 }
 0x106   :  { %v98_v9 = vpop.f32.mrf.mxu1 }
 0x107   :  { %v99_v10 = vadd.f32 %v137_v8, %v98_v9 }
 0x109   :  { %101 = vmax.xlane.f32.xlu0 %v99_v10 }
 0x17c   :  { %v102_v11 = vpop.xlane.xlu0 %101 }
 0x17d   :  { %v103_v12 = vsub.f32 %v99_v10, %v102_v11 }
 0x17f   :  { %v104_v13 = vmul.f32 1.442695, %v103_v12 }
 0x181   :  { %138 = vpow2.f32 %v104_v13 }
 0x187   :  { %v139_v14 = vpop.eup %138 }
 0x188   :  { %106 = vadd.xlane.f32.xlu0 %v139_v14 }
 0x1fb   :  { %v107_v15 = vpop.xlane.xlu0 %106 }
 0x1fc   :  { %140 = vrcp.f32 %v107_v15  ;;  %v119_v19 = vand.u32 2147483648, %v107_v15  ;;  %v117_v21 = vand.u32 2147483647, %v107_v15  ;;  %vm113_vm4 = vweird.f32 %v107_v15 }
 0x1fe   :  { %v120_v23 = vor.u32 1.1754944e-38, %v119_v19  ;;  %vm118_vm6 = vcmp.eq.f32.partialorder %v117_v21, 8.507059e+37 }
 0x202   :  { %v141_v16 = vpop.eup %140 }
 0x203   :  { %v109_v17 = vmul.f32 %v141_v16, %v107_v15  ;;  %vm114_vm3 = vweird.f32 %v141_v16 }
 0x204   :  { %vm115_vm5 = vmor %vm113_vm4, %vm114_vm3 }
 0x205   :  { %v110_v18 = vsub.f32 1.0, %v109_v17 }
 0x207   :  { %v111_v20 = vmul.f32 %v141_v16, %v110_v18 }
 0x209   :  { %v112_v22 = vadd.f32 %v141_v16, %v111_v20 }
 0x20b   :  { %v116_v24 = vsel %vm115_vm5, %v141_v16, %v112_v22 }
 0x20c   :  { %v121_v25 = vsel %vm118_vm6, %v120_v23, %v116_v24 }
 0x20d   :  { %v122_v26 = vmul.f32 %v139_v14, %v121_v25 }
 0x20f   :  { %124 = vst.msk [vmem:[%s224_s5] sm:$0xff] %vm123_vm7, %v122_v26 }
 0x210   :  { %129 = vsyncpa [#allocation3], 1 }

</bundles_post_ra>
